<compile_context>
chip_gen: v7x
topology: tpu7x:2x2x1
jax: 0.10.0
libtpu: 0.0.40
codegen_flags: <defaults>
</compile_context>

<pallas_src>
import jax
import jax.numpy as jnp
from jax.experimental import pallas as pl
from jax.experimental.pallas import tpu as pltpu

_LANE = 128      # lane width: pad latent dim to a multiple of this
_SUBLANE = 8     # sublane width: pad batch tiles to a multiple of this


def _round_up(x, m):
    return ((x + m - 1) // m) * m


def _autoencoder_kernel(x_ref, we_ref, be_ref, wd_ref, bd_ref,
                        recon_ref, latent_ref):
    # x_ref:      (TB, D_in)   bf16   input tile (streamed per grid step)
    # we_ref:     (D_in, HP)   bf16   encoder weight (grid-invariant, resident)
    # be_ref:     (1, HP)      f32    encoder bias   (grid-invariant, resident)
    # wd_ref:     (HP, D_in)   bf16   decoder weight (grid-invariant, resident)
    # bd_ref:     (1, D_in)    f32    decoder bias   (grid-invariant, resident)
    # recon_ref:  (TB, D_in)   f32
    # latent_ref: (TB, HP)     f32    (lane-dense; wrapper slices to Hlat)
    x = x_ref[...]

    # ---- encoder: Linear (bf16 MXU, f32 accumulate) + ReLU (f32 VPU) ----
    h = jnp.dot(x, we_ref[...], preferred_element_type=jnp.float32) + be_ref[...]
    h = jnp.maximum(h, 0.0)
    latent_ref[...] = h

    # ---- decoder: Linear (bf16 MXU, f32 accumulate) + Sigmoid ----
    y = jnp.dot(h.astype(jnp.bfloat16), wd_ref[...],
                preferred_element_type=jnp.float32) + bd_ref[...]
    # sigmoid via EUP exp + approx reciprocal (keeps VALU slots free)
    recon_ref[...] = pl.reciprocal(1.0 + jnp.exp(-y), approx=True)


def autoencoder_forward(x_nchw, w_enc, b_enc, w_dec, b_dec):
    """x_nchw: (B, C, H, W) float32.  Returns (reconstruction NCHW, latent)."""
    B, C, H, W = x_nchw.shape
    D_in = C * H * W
    Hlat = w_enc.shape[1]

    # Lane-dense latent: pad hidden dim to a multiple of 128 with zeros.
    # Zero weight columns / bias -> ReLU(0) = 0 in padded latent lanes; zero
    # decoder rows -> padded lanes contribute nothing to the reconstruction.
    HP = _round_up(Hlat, _LANE)

    # Batch tile: at most 256 rows, padded to a sublane multiple.
    TB = min(256, _round_up(B, _SUBLANE))
    B_pad = _round_up(B, TB)
    grid = (B_pad // TB,)

    # MXU operands in bf16 (f32 accumulation inside the kernel); biases f32.
    x_flat = x_nchw.reshape(B, D_in).astype(jnp.bfloat16)
    x_flat = jnp.pad(x_flat, ((0, B_pad - B), (0, 0)))
    w_enc_p = jnp.pad(w_enc, ((0, 0), (0, HP - Hlat))).astype(jnp.bfloat16)
    b_enc_p = jnp.pad(b_enc, ((0, 0), (0, HP - Hlat))).astype(jnp.float32)
    w_dec_p = jnp.pad(w_dec, ((0, HP - Hlat), (0, 0))).astype(jnp.bfloat16)
    b_dec_p = b_dec.astype(jnp.float32)

    recon_flat, latent = pl.pallas_call(
        _autoencoder_kernel,
        out_shape=(
            jax.ShapeDtypeStruct((B_pad, D_in), jnp.float32),
            jax.ShapeDtypeStruct((B_pad, HP), jnp.float32),
        ),
        grid=grid,
        in_specs=[
            # streamed batch tile
            pl.BlockSpec((TB, D_in), lambda i: (i, 0)),
            # grid-invariant weights / biases: constant index_map -> resident
            pl.BlockSpec((D_in, HP), lambda i: (0, 0)),
            pl.BlockSpec((1, HP), lambda i: (0, 0)),
            pl.BlockSpec((HP, D_in), lambda i: (0, 0)),
            pl.BlockSpec((1, D_in), lambda i: (0, 0)),
        ],
        out_specs=(
            pl.BlockSpec((TB, D_in), lambda i: (i, 0)),
            pl.BlockSpec((TB, HP), lambda i: (i, 0)),
        ),
        compiler_params=pltpu.CompilerParams(
            dimension_semantics=("parallel",),
            vmem_limit_bytes=64 << 20,
        ),
    )(x_flat, w_enc_p, b_enc_p, w_dec_p, b_dec_p)

    recon = recon_flat[:B].reshape(B, C, H, W)
    return recon, latent[:B, :Hlat]


def _reference_forward(x_nchw, w_enc, b_enc, w_dec, b_dec):
    B = x_nchw.shape[0]
    x = x_nchw.reshape(B, -1)
    h = jnp.maximum(x @ w_enc + b_enc, 0.0)
    y = jax.nn.sigmoid(h @ w_dec + b_dec)
    return y.reshape(x_nchw.shape), h


if __name__ == "__main__":
    # Small, deterministic shapes: batch=2, channels=4, spatial=16 -> D_in=1024,
    # latent hidden=32.
    B, C, H, W = 2, 4, 16, 16
    D_in = C * H * W
    Hlat = 32

    key = jax.random.PRNGKey(0)
    k_x, k_we, k_be, k_wd, k_bd = jax.random.split(key, 5)

    x = jax.random.normal(k_x, (B, C, H, W), dtype=jnp.float32)
    w_enc = jax.random.normal(k_we, (D_in, Hlat), dtype=jnp.float32) * 0.02
    b_enc = jax.random.normal(k_be, (1, Hlat), dtype=jnp.float32) * 0.02
    w_dec = jax.random.normal(k_wd, (Hlat, D_in), dtype=jnp.float32) * 0.02
    b_dec = jax.random.normal(k_bd, (1, D_in), dtype=jnp.float32) * 0.02

    recon, latent = autoencoder_forward(x, w_enc, b_enc, w_dec, b_dec)
    recon = jax.block_until_ready(recon)
    latent = jax.block_until_ready(latent)

    # Correctness check against a pure-JAX f32 reference.  Tolerances are
    # relaxed vs. the previous f32-only kernel because MXU inputs are bf16.
    recon_ref, latent_ref = _reference_forward(x, w_enc, b_enc, w_dec, b_dec)
    assert recon.shape == (B, C, H, W)
    assert latent.shape == (B, Hlat)
    assert jnp.allclose(recon, recon_ref, atol=2e-2, rtol=2e-2), (
        float(jnp.max(jnp.abs(recon - recon_ref))))
    assert jnp.allclose(latent, latent_ref, atol=5e-2, rtol=5e-2), (
        float(jnp.max(jnp.abs(latent - latent_ref))))

    print("KERNEL_OK")
</pallas_src>

<mosaic_0001>
module attributes {stable_mosaic.version = 11 : i64} {
  func.func @_autoencoder_kernel(%arg0: i32, %arg1: memref<8x1024xbf16, #tpu.memory_space<vmem>>, %arg2: memref<1024x128xbf16, #tpu.memory_space<vmem>>, %arg3: memref<1x128xf32, #tpu.memory_space<vmem>>, %arg4: memref<128x1024xbf16, #tpu.memory_space<vmem>>, %arg5: memref<1x1024xf32, #tpu.memory_space<vmem>>, %arg6: memref<8x1024xf32, #tpu.memory_space<vmem>>, %arg7: memref<8x128xf32, #tpu.memory_space<vmem>>) attributes {dimension_semantics = [#tpu.dimension_semantics<parallel>], iteration_bounds = array<i64: 1>, scalar_prefetch = 0 : i64, scratch_operands = 0 : i64, tpu.core_type = #tpu.core_type<tc>, window_params = [{transform_indices = @transform_0, window_bounds = array<i64: 8, 1024>}, {pipeline_mode = #tpu.pipeline_mode<synchronous>, transform_indices = @transform_1, window_bounds = array<i64: 1024, 128>}, {pipeline_mode = #tpu.pipeline_mode<synchronous>, transform_indices = @transform_2, window_bounds = array<i64: 1, 128>}, {pipeline_mode = #tpu.pipeline_mode<synchronous>, transform_indices = @transform_3, window_bounds = array<i64: 128, 1024>}, {pipeline_mode = #tpu.pipeline_mode<synchronous>, transform_indices = @transform_4, window_bounds = array<i64: 1, 1024>}, {transform_indices = @transform_5, window_bounds = array<i64: 8, 1024>}, {transform_indices = @transform_6, window_bounds = array<i64: 8, 128>}]} {
    %c0 = arith.constant 0 : index
    %c0_0 = arith.constant 0 : index
    %0 = vector.load %arg1[%c0, %c0_0] : memref<8x1024xbf16, #tpu.memory_space<vmem>>, vector<8x1024xbf16>
    %c0_1 = arith.constant 0 : index
    %c0_2 = arith.constant 0 : index
    %1 = vector.load %arg2[%c0_1, %c0_2] : memref<1024x128xbf16, #tpu.memory_space<vmem>>, vector<1024x128xbf16>
    %cst = arith.constant dense<0.000000e+00> : vector<8x128xf32>
    %2 = tpu.matmul %0, %1, %cst {dimension_numbers = #tpu.dot_dimension_numbers<[1], [0], [0], [1], [0, 0, 1, 1], [], []>} : vector<8x1024xbf16>, vector<1024x128xbf16>, vector<8x128xf32> -> vector<8x128xf32>
    %c0_3 = arith.constant 0 : index
    %c0_4 = arith.constant 0 : index
    %3 = vector.load %arg3[%c0_3, %c0_4] : memref<1x128xf32, #tpu.memory_space<vmem>>, vector<1x128xf32>
    %4 = vector.broadcast %3 : vector<1x128xf32> to vector<8x128xf32>
    %5 = arith.addf %2, %4 : vector<8x128xf32>
    %cst_5 = arith.constant 0.000000e+00 : f32
    %6 = vector.broadcast %cst_5 : f32 to vector<8x128xf32>
    %7 = arith.maximumf %5, %6 : vector<8x128xf32>
    %c0_6 = arith.constant 0 : index
    %c0_7 = arith.constant 0 : index
    %8 = vector.load %arg7[%c0_6, %c0_7] : memref<8x128xf32, #tpu.memory_space<vmem>>, vector<8x128xf32>
    tpu.vector_store %arg7[%c0_6, %c0_7], %7 {strides = array<i32>} : memref<8x128xf32, #tpu.memory_space<vmem>>, vector<8x128xf32>,
    %9 = arith.truncf %7 : vector<8x128xf32> to vector<8x128xbf16>
    %c0_8 = arith.constant 0 : index
    %c0_9 = arith.constant 0 : index
    %10 = vector.load %arg4[%c0_8, %c0_9] : memref<128x1024xbf16, #tpu.memory_space<vmem>>, vector<128x1024xbf16>
    %cst_10 = arith.constant dense<0.000000e+00> : vector<8x1024xf32>
    %11 = tpu.matmul %9, %10, %cst_10 {dimension_numbers = #tpu.dot_dimension_numbers<[1], [0], [0], [1], [0, 0, 1, 1], [], []>} : vector<8x128xbf16>, vector<128x1024xbf16>, vector<8x1024xf32> -> vector<8x1024xf32>
    %c0_11 = arith.constant 0 : index
    %c0_12 = arith.constant 0 : index
    %12 = vector.load %arg5[%c0_11, %c0_12] : memref<1x1024xf32, #tpu.memory_space<vmem>>, vector<1x1024xf32>
    %13 = vector.broadcast %12 : vector<1x1024xf32> to vector<8x1024xf32>
    %14 = arith.addf %11, %13 : vector<8x1024xf32>
    %cst_13 = arith.constant 0.000000e+00 : f32
    %15 = vector.broadcast %cst_13 : f32 to vector<8x1024xf32>
    %16 = arith.subf %15, %14 : vector<8x1024xf32>
    %17 = math.exp %16 : vector<8x1024xf32>
    %cst_14 = arith.constant 1.000000e+00 : f32
    %18 = vector.broadcast %cst_14 : f32 to vector<8x1024xf32>
    %19 = arith.addf %18, %17 : vector<8x1024xf32>
    %20 = tpu.reciprocal %19 {approx = true} : vector<8x1024xf32> -> vector<8x1024xf32>
    %c0_15 = arith.constant 0 : index
    %c0_16 = arith.constant 0 : index
    %21 = vector.load %arg6[%c0_15, %c0_16] : memref<8x1024xf32, #tpu.memory_space<vmem>>, vector<8x1024xf32>
    tpu.vector_store %arg6[%c0_15, %c0_16], %20 {strides = array<i32>} : memref<8x1024xf32, #tpu.memory_space<vmem>>, vector<8x1024xf32>,
    return
  }
  func.func @transform_0(%arg0: i32) -> (i32, i32) {
    %c0_i32 = arith.constant 0 : i32
    %c0_i32_0 = arith.constant 0 : i32
    return %arg0, %c0_i32 : i32, i32
  }
  func.func @transform_1(%arg0: i32) -> (i32, i32) {
    %c0_i32 = arith.constant 0 : i32
    %c0_i32_0 = arith.constant 0 : i32
    %c0_i32_1 = arith.constant 0 : i32
    return %c0_i32, %c0_i32_0 : i32, i32
  }
  func.func @transform_2(%arg0: i32) -> (i32, i32) {
    %c0_i32 = arith.constant 0 : i32
    %c0_i32_0 = arith.constant 0 : i32
    %c0_i32_1 = arith.constant 0 : i32
    return %c0_i32, %c0_i32_0 : i32, i32
  }
  func.func @transform_3(%arg0: i32) -> (i32, i32) {
    %c0_i32 = arith.constant 0 : i32
    %c0_i32_0 = arith.constant 0 : i32
    %c0_i32_1 = arith.constant 0 : i32
    return %c0_i32, %c0_i32_0 : i32, i32
  }
  func.func @transform_4(%arg0: i32) -> (i32, i32) {
    %c0_i32 = arith.constant 0 : i32
    %c0_i32_0 = arith.constant 0 : i32
    %c0_i32_1 = arith.constant 0 : i32
    return %c0_i32, %c0_i32_0 : i32, i32
  }
  func.func @transform_5(%arg0: i32) -> (i32, i32) {
    %c0_i32 = arith.constant 0 : i32
    %c0_i32_0 = arith.constant 0 : i32
    return %arg0, %c0_i32 : i32, i32
  }
  func.func @transform_6(%arg0: i32) -> (i32, i32) {
    %c0_i32 = arith.constant 0 : i32
    %c0_i32_0 = arith.constant 0 : i32
    return %arg0, %c0_i32 : i32, i32
  }
}

</mosaic_0001>

<bundles_post_ra>
// kernel: tpu_custom_call.1
= control target key start
LH: loop header
LB: loop body
LE: loop exit
PB: predicated region body
PF: predicated region fallthrough
CT: control target
= control target key end

     0   :  { %12 = vsyncpa [#allocation3], 0  ;;  %s2112_s0 = inlined_call_operand.hbm [shape: bf16[8,1024], index: 0, kind: input, shape index: {}]   ;;  %s2113_s1 = inlined_call_operand.hbm [shape: bf16[1024,128], index: 1, kind: input, shape index: {}]   ;;  %s2114_s2 = inlined_call_operand.hbm [shape: f32[1,128], index: 2, kind: input, shape index: {}]   ;;  %s2115_s3 = inlined_call_operand.hbm [shape: bf16[128,1024], index: 3, kind: input, shape index: {}]   ;;  %s2116_s4 = inlined_call_operand.hbm [shape: f32[1,1024], index: 4, kind: input, shape index: {}]   ;;  %s2117_s5 = inlined_call_operand.hbm [shape: f32[8,1024], index: 5, kind: output, shape index: {0}]   ;;  %s2118_s6 = inlined_call_operand.hbm [shape: f32[8,128], index: 6, kind: output, shape index: {1}]  }
   0x1   :  { %13 = vsyncpa [#allocation6], 0 }
   0x2   :  { %14 = vsyncpa [#allocation9], 0 }
   0x3   :  { %15 = vsyncpa [#allocation4], 0 }
   0x4   :  { %16 = vsyncpa [#allocation13], 0  ;;  %s1975_s21 = smov [#allocation5]   ;;  %s1811_s25 = scalar_lea.hbm %s2113_s1, 8192 }
   0x5   :  { %s32_s22 = sshll.u32 %s1975_s21, 4  ;;  %p1812_p0 = scmp.ne.s32.totalorder %s2113_s1, %s1811_s25  ;;  %s33_s22 = int_to_ptr.vmem [resolvable:$true] %s32_s22 }
   0x6   :  { %p1815_p1 = scmp.lt.u32.totalorder %s1811_s25, %s2113_s1 }
   0x8   :  { %p1817_p2 = pnand %p1815_p1, %p1812_p0 }
   0xa   :  { %1820 = shalt.err (!%p1817_p2)
}
   0xb   :  { %s1821_s30 = scalar_lea.vmem %s33_s22, 8192  ;;  %p1826_p4 = scmp.lt.s32.totalorder %s33_s22, %s33_s22 }
   0xc   :  { %p1822_p3 = scmp.ne.s32.totalorder %s33_s22, %s1821_s30  ;;  %p1827_p5 = scmp.lt.s32.totalorder %s1821_s30, %s1821_s30 }
   0xe   :  { %p1828_p6 = por %p1827_p5, %p1826_p4 }
  0x10   :  { %p1829_p7 = pnand %p1828_p6, %p1822_p3 }
  0x12   :  { %1832 = shalt.err (!%p1829_p7)
}
  0x13   :  { %s1976_s7 = smov 64   ;;  %s1977_s8 = smov 4  }
  0x14   :  { %38 = dma.hbm_to_vmem [thread:$0]  %s2113_s1, 8192, %s33_s22, [#allocation6], %s1976_s7, %s1976_s7, %s1977_s8  }
  0x15   :  { %s1978_s11 = smov [#allocation8]   ;;  %s1833_s15 = scalar_lea.hbm %s2115_s3, 8192 }
  0x16   :  { %s54_s12 = sshll.u32 %s1978_s11, 4  ;;  %p1834_p8 = scmp.ne.s32.totalorder %s2115_s3, %s1833_s15  ;;  %s55_s12 = int_to_ptr.vmem [resolvable:$true] %s54_s12 }
  0x17   :  { %p1837_p9 = scmp.lt.u32.totalorder %s1833_s15, %s2115_s3 }
  0x19   :  { %p1839_p10 = pnand %p1837_p9, %p1834_p8 }
  0x1b   :  { %1842 = shalt.err (!%p1839_p10)
}
  0x1c   :  { %s1843_s20 = scalar_lea.vmem %s55_s12, 8192  ;;  %p1848_p12 = scmp.lt.s32.totalorder %s55_s12, %s55_s12 }
  0x1d   :  { %p1844_p11 = scmp.ne.s32.totalorder %s55_s12, %s1843_s20  ;;  %p1849_p13 = scmp.lt.s32.totalorder %s1843_s20, %s1843_s20 }
  0x1f   :  { %p1850_p0 = por %p1849_p13, %p1848_p12 }
  0x21   :  { %p1851_p1 = pnand %p1850_p0, %p1844_p11 }
  0x23   :  { %1854 = shalt.err (!%p1851_p1)
}
  0x24   :  { %s1979_s1 = smov 512   ;;  %s1980_s21 = smov 32  }
  0x25   :  { %60 = dma.hbm_to_vmem [thread:$0]  %s2115_s3, 8192, %s55_s12, [#allocation9], %s1979_s1, %s1979_s1, %s1980_s21  }
  0x26   :  { %s1981_s24 = smov [#allocation2]   ;;  %s1982_s26 = smov [#allocation7]  }
  0x27   :  { %s23_s25 = sshll.u32 %s1981_s24, 4  ;;  %s45_s27 = sshll.u32 %s1982_s26, 4  ;;  %s24_s25 = int_to_ptr.vmem [resolvable:$true] %s23_s25  ;;  %s46_s27 = int_to_ptr.vmem [resolvable:$true] %s45_s27 }
  0x28   :  { %s1855_s30 = scalar_lea.hbm %s2112_s0, 512 }
  0x29   :  { %p1856_p2 = scmp.ne.s32.totalorder %s2112_s0, %s1855_s30  ;;  %p1859_p3 = scmp.lt.u32.totalorder %s1855_s30, %s2112_s0 }
  0x2b   :  { %p1861_p4 = pnand %p1859_p3, %p1856_p2 }
  0x2d   :  { %1864 = shalt.err (!%p1861_p4)
}
  0x2e   :  { %s1865_s3 = scalar_lea.vmem %s24_s25, 512  ;;  %p1870_p6 = scmp.lt.s32.totalorder %s24_s25, %s24_s25 }
  0x2f   :  { %p1866_p5 = scmp.ne.s32.totalorder %s24_s25, %s1865_s3  ;;  %p1871_p7 = scmp.lt.s32.totalorder %s1865_s3, %s1865_s3 }
  0x31   :  { %p1872_p8 = por %p1871_p7, %p1870_p6 }
  0x33   :  { %p1873_p9 = pnand %p1872_p8, %p1866_p5 }
  0x35   :  { %1876 = shalt.err (!%p1873_p9)
}
  0x36   :  { %26 = dma.hbm_to_vmem [thread:$0]  %s2112_s0, 512, %s24_s25, [#allocation3]  }
  0x37   :  { %s1877_s15 = scalar_lea.hbm %s2114_s2, 16 }
  0x38   :  { %p1878_p10 = scmp.ne.s32.totalorder %s2114_s2, %s1877_s15  ;;  %p1881_p11 = scmp.lt.u32.totalorder %s1877_s15, %s2114_s2 }
  0x3a   :  { %p1883_p12 = pnand %p1881_p11, %p1878_p10 }
  0x3c   :  { %1886 = shalt.err (!%p1883_p12)
}
  0x3d   :  { %s1887_s20 = scalar_lea.vmem %s46_s27, 16  ;;  %s1891_s1 = scalar_lea.vmem %s46_s27, 32 }
  0x3e   :  { %p1888_p13 = scmp.ne.s32.totalorder %s46_s27, %s1887_s20  ;;  %p1892_p0 = scmp.lt.s32.totalorder %s46_s27, %s46_s27 }
  0x3f   :  { %p1893_p1 = scmp.lt.s32.totalorder %s1891_s1, %s1887_s20 }
  0x41   :  { %p1894_p2 = por %p1893_p1, %p1892_p0 }
  0x43   :  { %p1895_p3 = pnand %p1894_p2, %p1888_p13 }
  0x45   :  { %1898 = shalt.err (!%p1895_p3)
}
  0x46   :  { %48 = dma.hbm_to_vmem [thread:$0]  %s2114_s2, 16, %s46_s27, [#allocation6]  }
  0x47   :  { %s1983_s22 = smov [#allocation10]   ;;  %s1899_s26 = scalar_lea.hbm %s2116_s4, 128 }
  0x48   :  { %s67_s23 = sshll.u32 %s1983_s22, 4  ;;  %p1900_p4 = scmp.ne.s32.totalorder %s2116_s4, %s1899_s26  ;;  %s68_s23 = int_to_ptr.vmem [resolvable:$true] %s67_s23 }
  0x49   :  { %p1903_p5 = scmp.lt.u32.totalorder %s1899_s26, %s2116_s4 }
  0x4b   :  { %p1905_p6 = pnand %p1903_p5, %p1900_p4 }
  0x4d   :  { %1908 = shalt.err (!%p1905_p6)
}
  0x4e   :  { %s1909_s8 = scalar_lea.vmem %s68_s23, 128  ;;  %p1914_p8 = scmp.lt.s32.totalorder %s68_s23, %s68_s23 }
  0x4f   :  { %p1910_p7 = scmp.ne.s32.totalorder %s68_s23, %s1909_s8  ;;  %p1915_p9 = scmp.lt.s32.totalorder %s1909_s8, %s1909_s8 }
  0x51   :  { %p1916_p10 = por %p1915_p9, %p1914_p8 }
  0x53   :  { %p1917_p11 = pnand %p1916_p10, %p1910_p7 }
  0x55   :  { %1920 = shalt.err (!%p1917_p11)
}
  0x56   :  { %70 = dma.hbm_to_vmem [thread:$0]  %s2116_s4, 128, %s68_s23, [#allocation9]  }
  0x57   :  { %1965 = dma.done.wait [#allocation3], 512  }
  0x58   :  { %1966 = vsyncadd [#allocation3], 4294966784 }
  0x59   :  { %1967 = dma.done.wait [#allocation6], 8208  }
  0x5a   :  { %1968 = vsyncadd [#allocation6], 4294959088 }
  0x5b   :  { %1969 = dma.done.wait [#allocation9], 8320  }
  0x5c   :  { %1970 = vsyncadd [#allocation9], 4294958976  ;;  %v1707_v0 = vld [vmem:[#allocation5 + $0x40] sm:$0xff]   ;;  %v1711_v4 = vld [vmem:[#allocation5 + $0x48] sm:$0xff]   ;;  %s1985_s4 = smov [#allocation12]  }
  0x5d   :  { %v1708_v1 = vld [vmem:[#allocation5 + $0xc0] sm:$0xff]   ;;  %1607 = vmatprep.subr.bf16.mxu0 %v1707_v0  ;;  %v1712_v5 = vld [vmem:[#allocation5 + $0xc8] sm:$0xff]   ;;  %v1715_v8 = vld [vmem:[#allocation5 + $0x50] sm:$0xff]   ;;  %s1455_s9 = sshll.u32 %s1985_s4, 4  ;;  %s1456_s9 = int_to_ptr.vmem [resolvable:$true] %s1455_s9 }
  0x5e   :  { %v1709_v2 = vld [vmem:[#allocation5] sm:$0xff]   ;;  %1629 = vmatprep.subr.bf16.mxu1 %v1708_v1  ;;  %v1713_v6 = vld [vmem:[#allocation5 + $0x8] sm:$0xff]   ;;  %v1716_v9 = vld [vmem:[#allocation5 + $0xd0] sm:$0xff]   ;;  %s1921_s10 = scalar_lea.vmem %s1456_s9, 128  ;;  %p1926_p13 = scmp.lt.s32.totalorder %s1456_s9, %s1456_s9 }
  0x5f   :  { %v1710_v3 = vld [vmem:[#allocation5 + $0x80] sm:$0xff]   ;;  %1608 = vmatpush3.bf16.msra.mxu0 %v1709_v2  ;;  %v1714_v7 = vld [vmem:[#allocation5 + $0x88] sm:$0xff]   ;;  %v1717_v10 = vld [vmem:[#allocation5 + $0x10] sm:$0xff]   ;;  %p1922_p12 = scmp.ne.s32.totalorder %s1456_s9, %s1921_s10  ;;  %p1927_p0 = scmp.lt.s32.totalorder %s1921_s10, %s1921_s10 }
  0x60   :  { %1630 = vmatpush3.bf16.msra.mxu1 %v1710_v3  ;;  %1609 = vmatprep.subr.bf16.mxu0 %v1711_v4  ;;  %v1718_v11 = vld [vmem:[#allocation5 + $0x90] sm:$0xff]   ;;  %v1719_v12 = vld [vmem:[#allocation5 + $0x58] sm:$0xff]   ;;  %v1723_v16 = vld [vmem:[#allocation5 + $0x60] sm:$0xff]  }
  0x61   :  { %1631 = vmatprep.subr.bf16.mxu1 %v1712_v5  ;;  %v1720_v13 = vld [vmem:[#allocation5 + $0xd8] sm:$0xff]   ;;  %v1724_v17 = vld [vmem:[#allocation5 + $0xe0] sm:$0xff]   ;;  %v1727_v20 = vld [vmem:[#allocation5 + $0x68] sm:$0xff]   ;;  %p1928_p1 = por %p1927_p0, %p1926_p13 }
  0x62   :  { %v1721_v14 = vld [vmem:[#allocation5 + $0x18] sm:$0xff]   ;;  %v1725_v18 = vld [vmem:[#allocation5 + $0x20] sm:$0xff]   ;;  %v1728_v21 = vld [vmem:[#allocation5 + $0xe8] sm:$0xff]  }
  0x63   :  { %1610 = vmatpush3.bf16.msra.mxu0 %v1713_v6  ;;  %v1722_v15 = vld [vmem:[#allocation5 + $0x98] sm:$0xff]   ;;  %v1726_v19 = vld [vmem:[#allocation5 + $0xa0] sm:$0xff]   ;;  %v1729_v22 = vld [vmem:[#allocation5 + $0x28] sm:$0xff]   ;;  %p1929_p2 = pnand %p1928_p1, %p1922_p12 }
  0x64   :  { %1632 = vmatpush3.bf16.msra.mxu1 %v1714_v7  ;;  %1611 = vmatprep.subr.bf16.mxu0 %v1715_v8  ;;  %v1730_v23 = vld [vmem:[#allocation5 + $0xa8] sm:$0xff]   ;;  %v1731_v24 = vld [vmem:[#allocation5 + $0x70] sm:$0xff]   ;;  %v1735_v28 = vld [vmem:[#allocation5 + $0x78] sm:$0xff]  }
  0x65   :  { %1633 = vmatprep.subr.bf16.mxu1 %v1716_v9  ;;  %v1732_v25 = vld [vmem:[#allocation5 + $0xf0] sm:$0xff]   ;;  %v1736_v29 = vld [vmem:[#allocation5 + $0xf8] sm:$0xff]   ;;  %v87_v32 = vld [vmem:[#allocation2] sm:$0xff] }
  0x66   :  { %v1733_v26 = vld [vmem:[#allocation5 + $0x30] sm:$0xff]   ;;  %v1737_v30 = vld [vmem:[#allocation5 + $0x38] sm:$0xff]   ;;  %v88_v33 = vld [vmem:[#allocation2 + $0x8] sm:$0xff]  ;;  %v1471_v34 = vcombine.low %v87_v32, %v87_v32  ;;  %v1472_v35 = vcombine.high %v87_v32, %v87_v32 }
  0x67   :  { %1612 = vmatpush3.bf16.msra.mxu0 %v1717_v10  ;;  %v1734_v27 = vld [vmem:[#allocation5 + $0xb0] sm:$0xff]   ;;  %v1738_v31 = vld [vmem:[#allocation5 + $0xb8] sm:$0xff]   ;;  %v1473_v36 = vcombine.low %v88_v33, %v88_v33  ;;  %v1474_v37 = vcombine.high %v88_v33, %v88_v33  ;;  %v1743_v38 = vld [vmem:[#allocation5 + $0x140] sm:$0xff]  }
  0x68   :  { %1634 = vmatpush3.bf16.msra.mxu1 %v1718_v11  ;;  %1613 = vmatprep.subr.bf16.mxu0 %v1719_v12  ;;  %v1744_v39 = vld [vmem:[#allocation5 + $0x1c0] sm:$0xff]   ;;  %v1747_v42 = vld [vmem:[#allocation5 + $0x148] sm:$0xff]   ;;  %v1751_v46 = vld [vmem:[#allocation5 + $0x150] sm:$0xff]  }
  0x69   :  { %1635 = vmatprep.subr.bf16.mxu1 %v1720_v13  ;;  %670 = vmatprep.mubr.bf16.mxu0 %v1472_v35  ;;  %v1745_v40 = vld [vmem:[#allocation5 + $0x100] sm:$0xff]   ;;  %v1748_v43 = vld [vmem:[#allocation5 + $0x1c8] sm:$0xff]   ;;  %v1752_v47 = vld [vmem:[#allocation5 + $0x1d0] sm:$0xff]  }
  0x6a   :  { %710 = vmatprep.mubr.bf16.mxu1 %v1474_v37  ;;  %v1746_v41 = vld [vmem:[#allocation5 + $0x180] sm:$0xff]   ;;  %v1749_v44 = vld [vmem:[#allocation5 + $0x108] sm:$0xff]   ;;  %v1753_v48 = vld [vmem:[#allocation5 + $0x110] sm:$0xff]  }
  0x6b   :  { %1614 = vmatpush3.bf16.msra.mxu0 %v1721_v14  ;;  %v1750_v45 = vld [vmem:[#allocation5 + $0x188] sm:$0xff]   ;;  %v1754_v49 = vld [vmem:[#allocation5 + $0x190] sm:$0xff]   ;;  %v1755_v50 = vld [vmem:[#allocation5 + $0x158] sm:$0xff]  }
  0x6c   :  { %1636 = vmatpush3.bf16.msra.mxu1 %v1722_v15  ;;  %1615 = vmatprep.subr.bf16.mxu0 %v1723_v16  ;;  %v1756_v51 = vld [vmem:[#allocation5 + $0x1d8] sm:$0xff]   ;;  %v1759_v54 = vld [vmem:[#allocation5 + $0x160] sm:$0xff]   ;;  %v1763_v58 = vld [vmem:[#allocation5 + $0x168] sm:$0xff]  }
  0x6d   :  { %1637 = vmatprep.subr.bf16.mxu1 %v1724_v17  ;;  %v1757_v52 = vld [vmem:[#allocation5 + $0x118] sm:$0xff]   ;;  %v1760_v55 = vld [vmem:[#allocation5 + $0x1e0] sm:$0xff]   ;;  %v1764_v59 = vld [vmem:[#allocation5 + $0x1e8] sm:$0xff]  }
  0x6e   :  { %v1758_v53 = vld [vmem:[#allocation5 + $0x198] sm:$0xff]   ;;  %v1761_v56 = vld [vmem:[#allocation5 + $0x120] sm:$0xff]   ;;  %v1765_v60 = vld [vmem:[#allocation5 + $0x128] sm:$0xff]  }
  0x6f   :  { %1616 = vmatpush3.bf16.msra.mxu0 %v1725_v18  ;;  %v1762_v57 = vld [vmem:[#allocation5 + $0x1a0] sm:$0xff]   ;;  %v1766_v61 = vld [vmem:[#allocation5 + $0x1a8] sm:$0xff]   ;;  %v1767_v62 = vld [vmem:[#allocation5 + $0x170] sm:$0xff]  }
  0x70   :  { %1638 = vmatpush3.bf16.msra.mxu1 %v1726_v19  ;;  %1617 = vmatprep.subr.bf16.mxu0 %v1727_v20  ;;  %v1768_v63 = vld [vmem:[#allocation5 + $0x1f0] sm:$0xff]   ;;  %v1771_v2 = vld [vmem:[#allocation5 + $0x178] sm:$0xff]   ;;  %v801_v12 = vld [vmem:[#allocation8] sm:$0xff] }
  0x71   :  { %1639 = vmatprep.subr.bf16.mxu1 %v1728_v21  ;;  %v1769_v0 = vld [vmem:[#allocation5 + $0x130] sm:$0xff]   ;;  %v1772_v3 = vld [vmem:[#allocation5 + $0x1f8] sm:$0xff]   ;;  %v805_v13 = vld [vmem:[#allocation8 + $0x20] sm:$0xff] }
  0x72   :  { %v1770_v1 = vld [vmem:[#allocation5 + $0x1b0] sm:$0xff]   ;;  %v1773_v4 = vld [vmem:[#allocation5 + $0x138] sm:$0xff]   ;;  %v1543_v15 = vcombine.low %v801_v12, %v805_v13  ;;  %v1544_v16 = vcombine.high %v801_v12, %v805_v13  ;;  %v809_v18 = vld [vmem:[#allocation8 + $0x40] sm:$0xff] }
  0x73   :  { %1618 = vmatpush3.bf16.msra.mxu0 %v1729_v22  ;;  %v1774_v5 = vld [vmem:[#allocation5 + $0x1b8] sm:$0xff]   ;;  %v89_v6 = vld [vmem:[#allocation2 + $0x10] sm:$0xff]  ;;  %v813_v19 = vld [vmem:[#allocation8 + $0x60] sm:$0xff] }
  0x74   :  { %1640 = vmatpush3.bf16.msra.mxu1 %v1730_v23  ;;  %1619 = vmatprep.subr.bf16.mxu0 %v1731_v24  ;;  %v1475_v7 = vcombine.low %v89_v6, %v89_v6  ;;  %v1476_v8 = vcombine.high %v89_v6, %v89_v6  ;;  %v90_v9 = vld [vmem:[#allocation2 + $0x18] sm:$0xff]  ;;  %v802_v14 = vld [vmem:[#allocation8 + $0x8] sm:$0xff]  ;;  %v1552_v22 = vcombine.high %v809_v18, %v813_v19  ;;  %v829_v35 = vld [vmem:[#allocation8 + $0xe0] sm:$0xff] }
  0x75   :  { %1641 = vmatprep.subr.bf16.mxu1 %v1732_v25  ;;  %v1477_v10 = vcombine.low %v90_v9, %v90_v9  ;;  %v1478_v11 = vcombine.high %v90_v9, %v90_v9  ;;  %v806_v17 = vld [vmem:[#allocation8 + $0x28] sm:$0xff]  ;;  %v817_v25 = vld [vmem:[#allocation8 + $0x80] sm:$0xff]  ;;  %v803_v12 = vld [vmem:[#allocation8 + $0x10] sm:$0xff] }
  0x76   :  { %v1545_v20 = vcombine.low %v802_v14, %v806_v17  ;;  %v1546_v21 = vcombine.high %v802_v14, %v806_v17  ;;  %v810_v23 = vld [vmem:[#allocation8 + $0x48] sm:$0xff]  ;;  %v807_v13 = vld [vmem:[#allocation8 + $0x30] sm:$0xff]  ;;  %v804_v14 = vld [vmem:[#allocation8 + $0x18] sm:$0xff] }
  0x77   :  { %1620 = vmatpush3.bf16.msra.mxu0 %v1733_v26  ;;  %v814_v24 = vld [vmem:[#allocation8 + $0x68] sm:$0xff]  ;;  %v1547_v17 = vcombine.low %v803_v12, %v807_v13 }
  0x78   :  { %1642 = vmatpush3.bf16.msra.mxu1 %v1734_v27  ;;  %1621 = vmatprep.subr.bf16.mxu0 %v1735_v28  ;;  %v1554_v26 = vcombine.high %v810_v23, %v814_v24  ;;  %v821_v27 = vld [vmem:[#allocation8 + $0xa0] sm:$0xff]  ;;  %v818_v28 = vld [vmem:[#allocation8 + $0x88] sm:$0xff] }
  0x79   :  { %1643 = vmatprep.subr.bf16.mxu1 %v1736_v29  ;;  %v822_v29 = vld [vmem:[#allocation8 + $0xa8] sm:$0xff]  ;;  %v1560_v32 = vcombine.high %v817_v25, %v821_v27 }
  0x7a   :  { %v1562_v33 = vcombine.high %v818_v28, %v822_v29  ;;  %v830_v37 = vld [vmem:[#allocation8 + $0xe8] sm:$0xff] }
  0x7b   :  { %1622 = vmatpush3.bf16.msra.mxu0 %v1737_v30  ;;  %v1551_v30 = vcombine.low %v809_v18, %v813_v19  ;;  %v858_v6 = vld [vmem:[#allocation8 + $0x1c8] sm:$0xff] }
  0x7c   :  { %1644 = vmatpush3.bf16.msra.mxu1 %v1738_v31  ;;  %1651 = vmatprep.subr.bf16.mxu0 %v1743_v38  ;;  %v1553_v31 = vcombine.low %v810_v23, %v814_v24  ;;  %v1559_v38 = vcombine.low %v817_v25, %v821_v27  ;;  %v1470_v23 = vld [vmem:[#allocation7] ss:$0 sm:$0xff] }
  0x7d   :  { %1673 = vmatprep.subr.bf16.mxu1 %v1744_v39  ;;  %v1561_v39 = vcombine.low %v818_v28, %v822_v29 }
  0x7e   :  { %671 = vmatmul.mubr.bf16.vlgmr.msra.gmra.mrb[0].mxu0 %v1471_v34  ;;  %v825_v34 = vld [vmem:[#allocation8 + $0xc0] sm:$0xff] }
  0x7f   :  { %711 = vmatmul.mubr.bf16.vlgmr.msra.gmra.mrb[0].mxu1 %v1473_v36  ;;  %1652 = vmatpush3.bf16.msra.mxu0 %v1745_v40  ;;  %v826_v36 = vld [vmem:[#allocation8 + $0xc8] sm:$0xff]  ;;  %v1568_v40 = vcombine.high %v825_v34, %v829_v35 }
  0x80   :  { %1674 = vmatpush3.bf16.msra.mxu1 %v1746_v41  ;;  %1653 = vmatprep.subr.bf16.mxu0 %v1747_v42  ;;  %v1570_v41 = vcombine.high %v826_v36, %v830_v37  ;;  %v833_v42 = vld [vmem:[#allocation8 + $0x100] sm:$0xff] }
  0x81   :  { %1675 = vmatprep.subr.bf16.mxu1 %v1748_v43  ;;  %750 = vmatprep.mubr.bf16.mxu0 %v1476_v8  ;;  %v837_v43 = vld [vmem:[#allocation8 + $0x120] sm:$0xff]  ;;  %v862_v8 = vld [vmem:[#allocation8 + $0x1e8] sm:$0xff] }
  0x82   :  { %790 = vmatprep.mubr.bf16.mxu1 %v1478_v11  ;;  %v1602_v11 = vcombine.high %v858_v6, %v862_v8 }
  0x83   :  { %1654 = vmatpush3.bf16.msra.mxu0 %v1749_v44  ;;  %v834_v44 = vld [vmem:[#allocation8 + $0x108] sm:$0xff] }
  0x84   :  { %1676 = vmatpush3.bf16.msra.mxu1 %v1750_v45  ;;  %1655 = vmatprep.subr.bf16.mxu0 %v1751_v46  ;;  %v838_v45 = vld [vmem:[#allocation8 + $0x128] sm:$0xff]  ;;  %v1567_v46 = vcombine.low %v825_v34, %v829_v35 }
  0x85   :  { %1677 = vmatprep.subr.bf16.mxu1 %v1752_v47  ;;  %v1569_v47 = vcombine.low %v826_v36, %v830_v37 }
  0x87   :  { %1656 = vmatpush3.bf16.msra.mxu0 %v1753_v48  ;;  %v1576_v48 = vcombine.high %v833_v42, %v837_v43 }
  0x88   :  { %1678 = vmatpush3.bf16.msra.mxu1 %v1754_v49  ;;  %1657 = vmatprep.subr.bf16.mxu0 %v1755_v50  ;;  %v1578_v49 = vcombine.high %v834_v44, %v838_v45  ;;  %v841_v50 = vld [vmem:[#allocation8 + $0x140] sm:$0xff] }
  0x89   :  { %1679 = vmatprep.subr.bf16.mxu1 %v1756_v51  ;;  %v845_v51 = vld [vmem:[#allocation8 + $0x160] sm:$0xff] }
  0x8b   :  { %1658 = vmatpush3.bf16.msra.mxu0 %v1757_v52  ;;  %v842_v52 = vld [vmem:[#allocation8 + $0x148] sm:$0xff] }
  0x8c   :  { %1680 = vmatpush3.bf16.msra.mxu1 %v1758_v53  ;;  %1659 = vmatprep.subr.bf16.mxu0 %v1759_v54  ;;  %v846_v53 = vld [vmem:[#allocation8 + $0x168] sm:$0xff]  ;;  %v1575_v54 = vcombine.low %v833_v42, %v837_v43 }
  0x8d   :  { %1681 = vmatprep.subr.bf16.mxu1 %v1760_v55  ;;  %v1577_v55 = vcombine.low %v834_v44, %v838_v45 }
  0x8f   :  { %1660 = vmatpush3.bf16.msra.mxu0 %v1761_v56  ;;  %v1584_v56 = vcombine.high %v841_v50, %v845_v51 }
  0x90   :  { %1682 = vmatpush3.bf16.msra.mxu1 %v1762_v57  ;;  %1661 = vmatprep.subr.bf16.mxu0 %v1763_v58  ;;  %v1586_v57 = vcombine.high %v842_v52, %v846_v53  ;;  %v1583_v58 = vcombine.low %v841_v50, %v845_v51 }
  0x91   :  { %1683 = vmatprep.subr.bf16.mxu1 %v1764_v59  ;;  %v1585_v59 = vcombine.low %v842_v52, %v846_v53 }
  0x93   :  { %1662 = vmatpush3.bf16.msra.mxu0 %v1765_v60  ;;  %v849_v60 = vld [vmem:[#allocation8 + $0x180] sm:$0xff] }
  0x94   :  { %1684 = vmatpush3.bf16.msra.mxu1 %v1766_v61  ;;  %1663 = vmatprep.subr.bf16.mxu0 %v1767_v62  ;;  %v853_v61 = vld [vmem:[#allocation8 + $0x1a0] sm:$0xff]  ;;  %v850_v62 = vld [vmem:[#allocation8 + $0x188] sm:$0xff] }
  0x95   :  { %1685 = vmatprep.subr.bf16.mxu1 %v1768_v63  ;;  %v1592_v63 = vcombine.high %v849_v60, %v853_v61 }
  0x97   :  { %1664 = vmatpush3.bf16.msra.mxu0 %v1769_v0  ;;  %v854_v0 = vld [vmem:[#allocation8 + $0x1a8] sm:$0xff] }
  0x98   :  { %1686 = vmatpush3.bf16.msra.mxu1 %v1770_v1  ;;  %1665 = vmatprep.subr.bf16.mxu0 %v1771_v2  ;;  %v1591_v1 = vcombine.low %v849_v60, %v853_v61  ;;  %v1593_v2 = vcombine.low %v850_v62, %v854_v0 }
  0x99   :  { %1687 = vmatprep.subr.bf16.mxu1 %v1772_v3  ;;  %v1594_v3 = vcombine.high %v850_v62, %v854_v0  ;;  %v827_v62 = vld [vmem:[#allocation8 + $0xd0] sm:$0xff]  ;;  %v828_v0 = vld [vmem:[#allocation8 + $0xd8] sm:$0xff] }
  0x9b   :  { %1666 = vmatpush3.bf16.msra.mxu0 %v1773_v4  ;;  %v857_v4 = vld [vmem:[#allocation8 + $0x1c0] sm:$0xff] }
  0x9c   :  { %1688 = vmatpush3.bf16.msra.mxu1 %v1774_v5  ;;  %1227 = vmatprep.subr.bf16.mxu0 %v1544_v16  ;;  %v861_v5 = vld [vmem:[#allocation8 + $0x1e0] sm:$0xff]  ;;  %v808_v16 = vld [vmem:[#allocation8 + $0x38] sm:$0xff] }
  0x9d   :  { %1268 = vmatprep.subr.bf16.mxu1 %v1546_v21  ;;  %v1599_v9 = vcombine.low %v857_v4, %v861_v5  ;;  %v1549_v18 = vcombine.low %v804_v14, %v808_v16  ;;  %v1550_v19 = vcombine.high %v804_v14, %v808_v16  ;;  %v843_v14 = vld [vmem:[#allocation8 + $0x150] sm:$0xff]  ;;  %v844_v16 = vld [vmem:[#allocation8 + $0x158] sm:$0xff] }
  0x9e   :  { %751 = vmatmul.mubr.bf16.vlgmr.msra.gmra.mrb[4].mxu0 %v1475_v7  ;;  %v1600_v7 = vcombine.high %v857_v4, %v861_v5 }
  0x9f   :  { %791 = vmatmul.mubr.bf16.vlgmr.msra.gmra.mrb[4].mxu1 %v1477_v10  ;;  %1228 = vmatpush1.bf16.msra.mxu0 %v1543_v15  ;;  %v1601_v10 = vcombine.low %v858_v6, %v862_v8  ;;  %v1548_v15 = vcombine.high %v803_v12, %v807_v13  ;;  %v835_v6 = vld [vmem:[#allocation8 + $0x110] sm:$0xff]  ;;  %v836_v8 = vld [vmem:[#allocation8 + $0x118] sm:$0xff] }
  0xa0   :  { %1269 = vmatpush1.bf16.msra.mxu1 %v1545_v20  ;;  %1229 = vmatprep.subr.bf16.mxu0 %v1552_v22  ;;  %v1984_v20 = vmov 0  }
  0xa1   :  { %1270 = vmatprep.subr.bf16.mxu1 %v1554_v26  ;;  %1259 = vmatprep.mubr.bf16.mxu0 %v1984_v20 }
  0xa2   :  { %1300 = vmatprep.mubr.bf16.mxu1 %v1984_v20 }
  0xa3   :  { %1230 = vmatpush1.bf16.msra.mxu0 %v1551_v30 }
  0xa4   :  { %1271 = vmatpush1.bf16.msra.mxu1 %v1553_v31  ;;  %1231 = vmatprep.subr.bf16.mxu0 %v1560_v32 }
  0xa5   :  { %1272 = vmatprep.subr.bf16.mxu1 %v1562_v33 }
  0xa7   :  { %1232 = vmatpush1.bf16.msra.mxu0 %v1559_v38 }
  0xa8   :  { %1273 = vmatpush1.bf16.msra.mxu1 %v1561_v39  ;;  %1233 = vmatprep.subr.bf16.mxu0 %v1568_v40 }
  0xa9   :  { %1274 = vmatprep.subr.bf16.mxu1 %v1570_v41 }
  0xab   :  { %1234 = vmatpush1.bf16.msra.mxu0 %v1567_v46  ;;  %v811_v46 = vld [vmem:[#allocation8 + $0x50] sm:$0xff] }
  0xac   :  { %1275 = vmatpush1.bf16.msra.mxu1 %v1569_v47  ;;  %1235 = vmatprep.subr.bf16.mxu0 %v1576_v48  ;;  %v815_v47 = vld [vmem:[#allocation8 + $0x70] sm:$0xff]  ;;  %v812_v48 = vld [vmem:[#allocation8 + $0x58] sm:$0xff] }
  0xad   :  { %1276 = vmatprep.subr.bf16.mxu1 %v1578_v49  ;;  %v816_v49 = vld [vmem:[#allocation8 + $0x78] sm:$0xff]  ;;  %v1556_v52 = vcombine.high %v811_v46, %v815_v47 }
  0xae   :  { %v1558_v53 = vcombine.high %v812_v48, %v816_v49 }
  0xaf   :  { %1236 = vmatpush1.bf16.msra.mxu0 %v1575_v54  ;;  %v819_v54 = vld [vmem:[#allocation8 + $0x90] sm:$0xff] }
  0xb0   :  { %1277 = vmatpush1.bf16.msra.mxu1 %v1577_v55  ;;  %1237 = vmatprep.subr.bf16.mxu0 %v1584_v56  ;;  %v823_v55 = vld [vmem:[#allocation8 + $0xb0] sm:$0xff]  ;;  %v820_v56 = vld [vmem:[#allocation8 + $0x98] sm:$0xff] }
  0xb1   :  { %1278 = vmatprep.subr.bf16.mxu1 %v1586_v57  ;;  %v824_v57 = vld [vmem:[#allocation8 + $0xb8] sm:$0xff]  ;;  %v1564_v60 = vcombine.high %v819_v54, %v823_v55 }
  0xb2   :  { %v1566_v61 = vcombine.high %v820_v56, %v824_v57 }
  0xb3   :  { %1238 = vmatpush1.bf16.msra.mxu0 %v1583_v58  ;;  %v1555_v58 = vcombine.low %v811_v46, %v815_v47 }
  0xb4   :  { %1279 = vmatpush1.bf16.msra.mxu1 %v1585_v59  ;;  %1239 = vmatprep.subr.bf16.mxu0 %v1592_v63  ;;  %v1557_v59 = vcombine.low %v812_v48, %v816_v49  ;;  %v831_v63 = vld [vmem:[#allocation8 + $0xf0] sm:$0xff] }
  0xb5   :  { %1280 = vmatprep.subr.bf16.mxu1 %v1594_v3  ;;  %v1565_v3 = vcombine.low %v820_v56, %v824_v57  ;;  %v1572_v4 = vcombine.high %v827_v62, %v831_v63 }
  0xb7   :  { %1240 = vmatpush1.bf16.msra.mxu0 %v1591_v1  ;;  %v832_v1 = vld [vmem:[#allocation8 + $0xf8] sm:$0xff] }
  0xb8   :  { %1281 = vmatpush1.bf16.msra.mxu1 %v1593_v2  ;;  %1241 = vmatprep.subr.bf16.mxu0 %v1600_v7  ;;  %v1563_v2 = vcombine.low %v819_v54, %v823_v55  ;;  %v1574_v5 = vcombine.high %v828_v0, %v832_v1  ;;  %v839_v7 = vld [vmem:[#allocation8 + $0x130] sm:$0xff] }
  0xb9   :  { %1282 = vmatprep.subr.bf16.mxu1 %v1602_v11  ;;  %v1573_v11 = vcombine.low %v828_v0, %v832_v1  ;;  %v1580_v12 = vcombine.high %v835_v6, %v839_v7 }
  0xbb   :  { %1242 = vmatpush1.bf16.msra.mxu0 %v1599_v9  ;;  %v840_v9 = vld [vmem:[#allocation8 + $0x138] sm:$0xff] }
  0xbc   :  { %1283 = vmatpush1.bf16.msra.mxu1 %v1601_v10  ;;  %1309 = vmatprep.subr.bf16.mxu0 %v1548_v15  ;;  %v1571_v10 = vcombine.low %v827_v62, %v831_v63  ;;  %v1582_v13 = vcombine.high %v836_v8, %v840_v9  ;;  %v847_v15 = vld [vmem:[#allocation8 + $0x170] sm:$0xff] }
  0xbd   :  { %1350 = vmatprep.subr.bf16.mxu1 %v1550_v19  ;;  %v1581_v19 = vcombine.low %v836_v8, %v840_v9 }
 0x151   :  { %v1623_v21 = vpop.f32.mrb[0].mxu0 }
 0x152   :  { %v1645_v22 = vpop.f32.mrb[0].mxu1  ;;  %v1624_v24 = vpop.f32.mrb[1].mxu0 }
 0x153   :  { %v1646_v25 = vpop.f32.mrb[1].mxu1  ;;  %v1625_v26 = vadd.f32 %v1624_v24, %v1623_v21  ;;  %v1626_v28 = vpop.f32.mrb[2].mxu0  ;;  %v852_v24 = vld [vmem:[#allocation8 + $0x198] sm:$0xff] }
 0x154   :  { %v1647_v27 = vadd.f32 %v1646_v25, %v1645_v22  ;;  %v1648_v29 = vpop.f32.mrb[2].mxu1  ;;  %v1627_v30 = vpop.f32.mrb[3].mxu0  ;;  %v851_v22 = vld [vmem:[#allocation8 + $0x190] sm:$0xff]  ;;  %v856_v25 = vld [vmem:[#allocation8 + $0x1b8] sm:$0xff] }
 0x155   :  { %v1649_v31 = vpop.f32.mrb[3].mxu1  ;;  %v673_v32 = vadd.f32 %v1625_v26, %v1470_v23  ;;  %v855_v23 = vld [vmem:[#allocation8 + $0x1b0] sm:$0xff]  ;;  %v1587_v26 = vcombine.low %v843_v14, %v847_v15  ;;  %v1598_v29 = vcombine.high %v852_v24, %v856_v25 }
 0x156   :  { %v1596_v28 = vcombine.high %v851_v22, %v855_v23  ;;  %v859_v30 = vld [vmem:[#allocation8 + $0x1d0] sm:$0xff] }
 0x157   :  { %v713_v33 = vadd.f32 %v1647_v27, %v673_v32  ;;  %v863_v31 = vld [vmem:[#allocation8 + $0x1f0] sm:$0xff]  ;;  %v860_v32 = vld [vmem:[#allocation8 + $0x1d8] sm:$0xff] }
 0x171   :  { %v1667_v34 = vpop.f32.mrb[4].mxu0 }
 0x172   :  { %v1689_v35 = vpop.f32.mrb[4].mxu1  ;;  %v1668_v36 = vpop.f32.mrb[5].mxu0 }
 0x173   :  { %v1690_v37 = vpop.f32.mrb[5].mxu1  ;;  %v1669_v38 = vadd.f32 %v1668_v36, %v1667_v34  ;;  %v1670_v40 = vpop.f32.mrb[6].mxu0  ;;  %v1595_v34 = vcombine.low %v851_v22, %v855_v23  ;;  %v1604_v36 = vcombine.high %v859_v30, %v863_v31 }
 0x174   :  { %v1691_v39 = vadd.f32 %v1690_v37, %v1689_v35  ;;  %v1692_v41 = vpop.f32.mrb[6].mxu1  ;;  %v1671_v42 = vpop.f32.mrb[7].mxu0  ;;  %v1597_v35 = vcombine.low %v852_v24, %v856_v25 }
 0x175   :  { %v1693_v43 = vpop.f32.mrb[7].mxu1  ;;  %v753_v44 = vadd.f32 %v1669_v38, %v713_v33  ;;  %v864_v33 = vld [vmem:[#allocation8 + $0x1f8] sm:$0xff]  ;;  %v1603_v38 = vcombine.low %v859_v30, %v863_v31 }
 0x176   :  { %v1606_v37 = vcombine.high %v860_v32, %v864_v33 }
 0x177   :  { %v793_v45 = vadd.f32 %v1691_v39, %v753_v44  ;;  %v1605_v39 = vcombine.low %v860_v32, %v864_v33 }
 0x179   :  { %v798_v50 = vmax.f32 %v793_v45, 0.0 }
 0x17b   :  { %v2082_v51 = vpack.c.bf16 %v798_v50, %v798_v50  ;;  %799 = vst [vmem:[#allocation12] sm:$0xff] %v798_v50 }
 0x17d   :  { %1260 = vmatmul.mubr.bf16.vlgmr.msra.gmra.mrb[8].mxu0 %v2082_v51  ;;  %1301 = vmatmul.mubr.bf16.vlgmr.msra.gmra.mrb[8].mxu1 %v2082_v51 }
 0x17e   :  { %1310 = vmatpush1.bf16.msra.mxu0 %v1547_v17  ;;  %1351 = vmatpush1.bf16.msra.mxu1 %v1549_v18  ;;  %v848_v17 = vld [vmem:[#allocation8 + $0x178] sm:$0xff]  ;;  %v1579_v18 = vcombine.low %v835_v6, %v839_v7 }
 0x17f   :  { %1311 = vmatprep.subr.bf16.mxu0 %v1556_v52  ;;  %1352 = vmatprep.subr.bf16.mxu1 %v1558_v53  ;;  %v1590_v21 = vcombine.high %v844_v16, %v848_v17  ;;  %v1589_v27 = vcombine.low %v844_v16, %v848_v17 }
 0x180   :  { %1341 = vmatprep.mubr.bf16.mxu0 %v1984_v20  ;;  %1382 = vmatprep.mubr.bf16.mxu1 %v1984_v20  ;;  %v1588_v20 = vcombine.high %v843_v14, %v847_v15 }
 0x182   :  { %1312 = vmatpush1.bf16.msra.mxu0 %v1555_v58  ;;  %1353 = vmatpush1.bf16.msra.mxu1 %v1557_v59 }
 0x183   :  { %1313 = vmatprep.subr.bf16.mxu0 %v1564_v60  ;;  %1354 = vmatprep.subr.bf16.mxu1 %v1566_v61 }
 0x186   :  { %1314 = vmatpush1.bf16.msra.mxu0 %v1563_v2  ;;  %1355 = vmatpush1.bf16.msra.mxu1 %v1565_v3 }
 0x187   :  { %1315 = vmatprep.subr.bf16.mxu0 %v1572_v4  ;;  %1356 = vmatprep.subr.bf16.mxu1 %v1574_v5 }
 0x18a   :  { %1316 = vmatpush1.bf16.msra.mxu0 %v1571_v10  ;;  %1357 = vmatpush1.bf16.msra.mxu1 %v1573_v11 }
 0x18b   :  { %1317 = vmatprep.subr.bf16.mxu0 %v1580_v12  ;;  %1358 = vmatprep.subr.bf16.mxu1 %v1582_v13 }
 0x18e   :  { %1318 = vmatpush1.bf16.msra.mxu0 %v1579_v18  ;;  %1359 = vmatpush1.bf16.msra.mxu1 %v1581_v19 }
 0x18f   :  { %1319 = vmatprep.subr.bf16.mxu0 %v1588_v20  ;;  %1360 = vmatprep.subr.bf16.mxu1 %v1590_v21 }
 0x192   :  { %1320 = vmatpush1.bf16.msra.mxu0 %v1587_v26  ;;  %1361 = vmatpush1.bf16.msra.mxu1 %v1589_v27 }
 0x193   :  { %1321 = vmatprep.subr.bf16.mxu0 %v1596_v28  ;;  %1362 = vmatprep.subr.bf16.mxu1 %v1598_v29 }
 0x196   :  { %1322 = vmatpush1.bf16.msra.mxu0 %v1595_v34  ;;  %1363 = vmatpush1.bf16.msra.mxu1 %v1597_v35 }
 0x197   :  { %1323 = vmatprep.subr.bf16.mxu0 %v1604_v36  ;;  %1364 = vmatprep.subr.bf16.mxu1 %v1606_v37 }
 0x19a   :  { %1324 = vmatpush1.bf16.msra.mxu0 %v1603_v38  ;;  %1365 = vmatpush1.bf16.msra.mxu1 %v1605_v39 }
 0x19d   :  { %1342 = vmatmul.mubr.bf16.vlgmr.msra.gmra.mrb[12].mxu0 %v2082_v51  ;;  %1383 = vmatmul.mubr.bf16.vlgmr.msra.gmra.mrb[12].mxu1 %v2082_v51 }
 0x19e   :  { %1932 = shalt.err (!%p1929_p2)
}
 0x19f   :  { %s1933_s12 = scalar_lea.hbm %s2118_s6, 128 }
 0x1a0   :  { %p1934_p3 = scmp.ne.s32.totalorder %s2118_s6, %s1933_s12  ;;  %p1937_p4 = scmp.lt.u32.totalorder %s1933_s12, %s2118_s6 }
 0x1a2   :  { %p1939_p5 = pnand %p1937_p4, %p1934_p3 }
 0x1a4   :  { %1942 = shalt.err (!%p1939_p5)
}
 0x1a5   :  { %1458 = dma.vmem_to_hbm [thread:$0]  %s1456_s9, 128, %s2118_s6, [#allocation13]   ;;  %v867_v40 = vlaneseq  ;;  %v865_v44 = vld [vmem:[#allocation10] sm:$0xff] }
 0x1a6   :  { %s1986_s6 = smov [#allocation11]  }
 0x1a7   :  { %v868_v41 = vshrl.u32 %v867_v40, 7  ;;  %s1445_s19 = sshll.u32 %s1986_s6, 4  ;;  %s1446_s19 = int_to_ptr.vmem [resolvable:$true] %s1445_s19 }
 0x1a8   :  { %s1943_s20 = scalar_lea.vmem %s1446_s19, 1024  ;;  %p1948_p7 = scmp.lt.s32.totalorder %s1446_s19, %s1446_s19 }
 0x1a9   :  { %v869_v42 = vsub.s32 0, %v868_v41  ;;  %v877_v43 = vsub.s32 2, %v868_v41  ;;  %v873_v45 = vsub.s32 1, %v868_v41  ;;  %v881_v46 = vsub.s32 3, %v868_v41  ;;  %p1944_p6 = scmp.ne.s32.totalorder %s1446_s19, %s1943_s20  ;;  %p1949_p8 = scmp.lt.s32.totalorder %s1943_s20, %s1943_s20 }
 0x1aa   :  { %v885_v15 = vsub.s32 4, %v868_v41  ;;  %v893_v16 = vsub.s32 6, %v868_v41  ;;  %v889_v17 = vsub.s32 5, %v868_v41  ;;  %v897_v18 = vsub.s32 7, %v868_v41 }
 0x1ab   :  { %v870_v47 = vrot.slane %v865_v44, %v869_v42  ;;  %v878_v48 = vrot.slane %v865_v44, %v877_v43  ;;  %v874_v49 = vrot.slane %v865_v44, %v873_v45  ;;  %v882_v50 = vrot.slane %v865_v44, %v881_v46  ;;  %p1950_p9 = por %p1949_p8, %p1948_p7 }
 0x1ac   :  { %v886_v19 = vrot.slane %v865_v44, %v885_v15  ;;  %v894_v20 = vrot.slane %v865_v44, %v893_v16  ;;  %v890_v22 = vrot.slane %v865_v44, %v889_v17  ;;  %v898_v23 = vrot.slane %v865_v44, %v897_v18 }
 0x1ad   :  { %p1951_p10 = pnand %p1950_p9, %p1944_p6 }
 0x250   :  { %v1261_v51 = vpop.f32.mrb[8].mxu0  ;;  %v1302_v52 = vpop.f32.mrb[8].mxu1 }
 0x251   :  { %v1262_v53 = vadd.f32 %v1261_v51, %v870_v47  ;;  %v1303_v54 = vadd.f32 %v1302_v52, %v878_v48  ;;  %v1263_v55 = vpop.f32.mrb[9].mxu0  ;;  %v1304_v56 = vpop.f32.mrb[9].mxu1 }
 0x252   :  { %v1264_v57 = vadd.f32 %v1263_v55, %v874_v49  ;;  %v1305_v58 = vadd.f32 %v1304_v56, %v882_v50  ;;  %v1265_v59 = vpop.f32.mrb[10].mxu0  ;;  %v1306_v60 = vpop.f32.mrb[10].mxu1 }
 0x253   :  { %v1391_v61 = vsub.f32 0.0, %v1262_v53  ;;  %v1393_v62 = vsub.f32 0.0, %v1303_v54  ;;  %v1266_v63 = vpop.f32.mrb[11].mxu0  ;;  %v1307_v0 = vpop.f32.mrb[11].mxu1 }
 0x254   :  { %v1392_v1 = vsub.f32 0.0, %v1264_v57  ;;  %v1394_v2 = vsub.f32 0.0, %v1305_v58 }
 0x255   :  { %v1399_v3 = vmul.f32 1.442695, %v1391_v61  ;;  %v1403_v4 = vmul.f32 1.442695, %v1393_v62 }
 0x256   :  { %v1401_v5 = vmul.f32 1.442695, %v1392_v1  ;;  %v1405_v6 = vmul.f32 1.442695, %v1394_v2 }
 0x257   :  { %1779 = vpow2.f32 %v1399_v3 }
 0x258   :  { %1781 = vpow2.f32 %v1403_v4 }
 0x259   :  { %1783 = vpow2.f32 %v1401_v5 }
 0x25a   :  { %1785 = vpow2.f32 %v1405_v6 }
 0x261   :  { %v1780_v7 = vpop.eup %1779 }
 0x262   :  { %v1782_v8 = vpop.eup %1781  ;;  %v1415_v9 = vadd.f32 1.0, %v1780_v7 }
 0x263   :  { %v1784_v10 = vpop.eup %1783  ;;  %v1417_v11 = vadd.f32 1.0, %v1782_v8 }
 0x264   :  { %v1786_v12 = vpop.eup %1785  ;;  %1787 = vrcp.f32 %v1415_v9  ;;  %v1416_v13 = vadd.f32 1.0, %v1784_v10 }
 0x265   :  { %1789 = vrcp.f32 %v1417_v11  ;;  %v1418_v14 = vadd.f32 1.0, %v1786_v12 }
 0x266   :  { %1791 = vrcp.f32 %v1416_v13 }
 0x267   :  { %1793 = vrcp.f32 %v1418_v14 }
 0x26e   :  { %v1788_v21 = vpop.eup %1787 }
 0x26f   :  { %v1790_v24 = vpop.eup %1789  ;;  %1431 = vst [vmem:[#allocation11] sm:$0xff] %v1788_v21 }
 0x270   :  { %v1792_v25 = vpop.eup %1791  ;;  %1433 = vst [vmem:[#allocation11 + $0x10] sm:$0xff] %v1790_v24  ;;  %v1343_v26 = vpop.f32.mrb[12].mxu0 }
 0x271   :  { %v1384_v27 = vpop.f32.mrb[12].mxu1  ;;  %v1794_v28 = vpop.eup %1793  ;;  %1432 = vst [vmem:[#allocation11 + $0x8] sm:$0xff] %v1792_v25  ;;  %v1344_v29 = vadd.f32 %v1343_v26, %v886_v19 }
 0x272   :  { %v1385_v30 = vadd.f32 %v1384_v27, %v894_v20  ;;  %v1345_v31 = vpop.f32.mrb[13].mxu0  ;;  %v1386_v32 = vpop.f32.mrb[13].mxu1  ;;  %1434 = vst [vmem:[#allocation11 + $0x18] sm:$0xff] %v1794_v28 }
 0x273   :  { %v1346_v33 = vadd.f32 %v1345_v31, %v890_v22  ;;  %v1387_v34 = vadd.f32 %v1386_v32, %v898_v23  ;;  %v1347_v35 = vpop.f32.mrb[14].mxu0  ;;  %v1388_v36 = vpop.f32.mrb[14].mxu1  ;;  %v1395_v37 = vsub.f32 0.0, %v1344_v29 }
 0x274   :  { %v1397_v38 = vsub.f32 0.0, %v1385_v30  ;;  %v1348_v39 = vpop.f32.mrb[15].mxu0  ;;  %v1389_v40 = vpop.f32.mrb[15].mxu1 }
 0x275   :  { %v1396_v41 = vsub.f32 0.0, %v1346_v33  ;;  %v1398_v42 = vsub.f32 0.0, %v1387_v34  ;;  %v1407_v43 = vmul.f32 1.442695, %v1395_v37 }
 0x276   :  { %v1411_v44 = vmul.f32 1.442695, %v1397_v38 }
 0x277   :  { %v1409_v45 = vmul.f32 1.442695, %v1396_v41  ;;  %v1413_v46 = vmul.f32 1.442695, %v1398_v42  ;;  %1795 = vpow2.f32 %v1407_v43 }
 0x278   :  { %1797 = vpow2.f32 %v1411_v44 }
 0x279   :  { %1799 = vpow2.f32 %v1409_v45 }
 0x27a   :  { %1801 = vpow2.f32 %v1413_v46 }
 0x281   :  { %v1796_v47 = vpop.eup %1795 }
 0x282   :  { %v1798_v48 = vpop.eup %1797  ;;  %v1419_v49 = vadd.f32 1.0, %v1796_v47 }
 0x283   :  { %v1800_v50 = vpop.eup %1799  ;;  %v1421_v51 = vadd.f32 1.0, %v1798_v48 }
 0x284   :  { %v1802_v52 = vpop.eup %1801  ;;  %1803 = vrcp.f32 %v1419_v49  ;;  %v1420_v53 = vadd.f32 1.0, %v1800_v50 }
 0x285   :  { %1805 = vrcp.f32 %v1421_v51  ;;  %v1422_v54 = vadd.f32 1.0, %v1802_v52 }
 0x286   :  { %1807 = vrcp.f32 %v1420_v53 }
 0x287   :  { %1809 = vrcp.f32 %v1422_v54 }
 0x28e   :  { %v1804_v55 = vpop.eup %1803 }
 0x28f   :  { %v1806_v56 = vpop.eup %1805  ;;  %1435 = vst [vmem:[#allocation11 + $0x20] sm:$0xff] %v1804_v55 }
 0x290   :  { %v1808_v57 = vpop.eup %1807  ;;  %1437 = vst [vmem:[#allocation11 + $0x30] sm:$0xff] %v1806_v56 }
 0x291   :  { %v1810_v58 = vpop.eup %1809  ;;  %1436 = vst [vmem:[#allocation11 + $0x28] sm:$0xff] %v1808_v57 }
 0x292   :  { %1438 = vst [vmem:[#allocation11 + $0x38] sm:$0xff] %v1810_v58 }
 0x293   :  { %1954 = shalt.err (!%p1951_p10)
}
 0x294   :  { %s1955_s21 = scalar_lea.hbm %s2117_s5, 1024 }
 0x295   :  { %p1956_p11 = scmp.ne.s32.totalorder %s2117_s5, %s1955_s21  ;;  %p1959_p12 = scmp.lt.u32.totalorder %s1955_s21, %s2117_s5 }
 0x297   :  { %p1961_p13 = pnand %p1959_p12, %p1956_p11 }
 0x299   :  { %1964 = shalt.err (!%p1961_p13)
}
 0x29a   :  { %1448 = dma.vmem_to_hbm [thread:$0]  %s1446_s19, 1024, %s2117_s5, [#allocation4]  }
 0x29b   :  { %1971 = dma.done.wait [#allocation4], 1024  }
 0x29c   :  { %1972 = vsyncadd [#allocation4], 4294966272 }
 0x29d   :  { %1973 = dma.done.wait [#allocation13], 128  }
 0x29e   :  { %1974 = vsyncadd [#allocation13], 4294967168 }
 0x29f   :  { %1465 = vsyncpa [#allocation3], 1 }
 0x2a0   :  { %1466 = vsyncpa [#allocation6], 1 }
 0x2a1   :  { %1467 = vsyncpa [#allocation9], 1 }
 0x2a2   :  { %1468 = vsyncpa [#allocation4], 1 }
 0x2a3   :  { %1469 = vsyncpa [#allocation13], 1 }

</bundles_post_ra>
